<compile_context>
chip_gen: v7x
topology: tpu7x:2x2x1
jax: 0.10.0
libtpu: 0.0.40
codegen_flags: <defaults>
</compile_context>

<pallas_src>
import jax
import jax.numpy as jnp
from jax.experimental import pallas as pl
from jax.experimental.pallas import tpu as pltpu

# ---- module hyper-parameters (globals T, H, DR in the original file) --------
T = 8            # BatchNorm1d num_features (sequence/channel dim)
H = 128          # hidden size of the Linear layers
DR = 0.1         # dropout prob (identity in eval mode)
N_FC = 2         # n_fc
EMB_INPUT_SIZE = 32
IS_FIRST = True
EPS = 1e-5

B = 4            # batch
ROWS = B * T     # flattened rows (32) -- whole problem fits one grid step
AFF_W = H + 8    # packed affine slab width: lanes [0,H)=add, lane H=row scale


# ------------------------------ Pallas kernel --------------------------------
def embedded_mapping_kernel(x_ref, w_ref, aff_ref, o_ref):
    """Whole eval-mode forward in one grid step.

    x_ref   : (ROWS, E)          f32 flattened input rows
    w_ref   : (N_FC, H, H)       f32 Linear weights; W0 zero-padded along K
    aff_ref : (N_FC, ROWS, H+8)  f32 per-layer post-matmul affine:
                                 [:, :H] = additive term, [:, H] = row scale
    o_ref   : (ROWS, H)          f32 output rows
    """
    # Layer 0: Linear(E->H) on the MXU (f32).  norm0 + bias + BN_0 affine are
    # pre-folded into aff[0] (norm0 moved past the matmul at init time).
    h = jnp.dot(x_ref[...], w_ref[0][:EMB_INPUT_SIZE, :],
                preferred_element_type=jnp.float32)
    aff = aff_ref[0]                                        # (ROWS, H+8)
    h = jnp.maximum(h * aff[:, H:H + 1] + aff[:, :H], 0.0)  # scale/add + ReLU

    # Layers 1..N_FC-1: Linear(H->H) + folded bias/BN affine + ReLU.
    # (Dropout == identity in eval mode.)
    for i in range(1, N_FC):
        h = jnp.dot(h, w_ref[i], preferred_element_type=jnp.float32)
        aff = aff_ref[i]
        h = jnp.maximum(h * aff[:, H:H + 1] + aff[:, :H], 0.0)

    o_ref[...] = h


# -------------------------- hot path (per call) -------------------------------
@jax.jit
def embedded_mapping_forward(x, w_all, aff):
    """x: (B, T, E) f32.  w_all/aff come from prepare_params (hoisted)."""
    Bb, Tt, E = x.shape
    rows = Bb * Tt
    x2 = x.reshape(rows, E)

    out2 = pl.pallas_call(
        embedded_mapping_kernel,
        out_shape=jax.ShapeDtypeStruct((rows, H), jnp.float32),
        grid=(1,),                               # whole problem < 0.5 MiB VMEM
        in_specs=[
            pl.BlockSpec((rows, E), lambda i: (0, 0)),            # x rows
            pl.BlockSpec((N_FC, H, H), lambda i: (0, 0, 0)),      # weight stack
            pl.BlockSpec((N_FC, rows, AFF_W), lambda i: (0, 0, 0)),  # affine slab
        ],
        out_specs=pl.BlockSpec((rows, H), lambda i: (0, 0)),
        compiler_params=pltpu.CompilerParams(
            dimension_semantics=("arbitrary",)),
    )(x2, w_all, aff)

    return out2.reshape(Bb, Tt, H)


# ---------------- one-time parameter packing (hoisted out of hot path) --------
def prepare_params(params, batch_size):
    """Fold BN stats, move norm0 past the first matmul, pack weights/affines.

    Runs once at model init.  Result is tied to `batch_size` (rows are
    b-major, t = row % T, so the T-indexed tables are exact tiles).
    """
    def bn_fold(g, b, m, v):
        s = g / jnp.sqrt(v + EPS)
        return s, b - m * s

    rows = batch_size * T

    s0, sh0 = bn_fold(*params["norm0"])           # (T,), (T,)
    W0, b0 = params["fc"][0]                      # (E, H), (H,)
    c0 = jnp.sum(W0, axis=0)                      # colsum(W0), (H,)

    scales_t, adds_t = [], []
    for i in range(N_FC):
        _, bi = params["fc"][i]
        s_bn, sh_bn = bn_fold(*params["norms"][i])
        if i == 0:
            # (s0*x + sh0) @ W0 + b0, then BN_0 affine:
            #   = (s0*s_bn) * (x@W0) + s_bn*(sh0*c0 + b0) + sh_bn
            scales_t.append(s0 * s_bn)                                    # (T,)
            adds_t.append(s_bn[:, None] * (sh0[:, None] * c0[None, :]
                                           + b0[None, :]) + sh_bn[:, None])  # (T, H)
        else:
            scales_t.append(s_bn)
            adds_t.append(s_bn[:, None] * bi[None, :] + sh_bn[:, None])

    # Tile T-indexed tables to batch_size*T rows (exact tile, no gather).
    aff = jnp.zeros((N_FC, rows, AFF_W), jnp.float32)
    for i in range(N_FC):
        aff = aff.at[i, :, :H].set(jnp.tile(adds_t[i], (batch_size, 1)))
        aff = aff.at[i, :, H].set(jnp.tile(scales_t[i], batch_size))

    # Single weight stack; W0 zero-padded along K so every layer is (H, H).
    w_all = jnp.zeros((N_FC, H, H), jnp.float32)
    w_all = w_all.at[0, :EMB_INPUT_SIZE, :].set(W0)
    for i in range(1, N_FC):
        w_all = w_all.at[i].set(params["fc"][i][0])

    return jax.device_put(w_all), jax.device_put(aff)


# ------------------------- pure-JAX reference --------------------------------
def ref_forward(x, params):
    def bn(h, g, b, m, v):
        # BatchNorm1d(T) in eval mode on (B, T, L)
        return (g[None, :, None] * (h - m[None, :, None])
                / jnp.sqrt(v[None, :, None] + EPS) + b[None, :, None])

    h = bn(x, *params["norm0"])
    for i in range(N_FC):
        W, bias = params["fc"][i]
        h = h @ W + bias                    # Linear on last dim
        h = bn(h, *params["norms"][i])
        h = jnp.maximum(h, 0.0)             # ReLU; Dropout = identity (eval)
    return h


# ---------------------- deterministic parameter init -------------------------
def init_params(key):
    keys = iter(jax.random.split(key, 64))

    def bn_params(num_features):
        g = 1.0 + 0.1 * jax.random.normal(next(keys), (num_features,), jnp.float32)
        b = 0.1 * jax.random.normal(next(keys), (num_features,), jnp.float32)
        m = 0.1 * jax.random.normal(next(keys), (num_features,), jnp.float32)
        v = jnp.abs(1.0 + 0.1 * jax.random.normal(next(keys), (num_features,), jnp.float32))
        return (g, b, m, v)

    def linear_params(fan_in, fan_out):
        bound = 1.0 / jnp.sqrt(fan_in)
        W = jax.random.uniform(next(keys), (fan_in, fan_out), jnp.float32, -bound, bound)
        b = jax.random.uniform(next(keys), (fan_out,), jnp.float32, -bound, bound)
        return (W, b)

    fc = []
    if IS_FIRST:
        fc.append(linear_params(EMB_INPUT_SIZE, H))
        for _ in range(N_FC - 1):
            fc.append(linear_params(H, H))
    else:
        for _ in range(N_FC):
            fc.append(linear_params(H, H))

    return {
        "norm0": bn_params(T),
        "fc": fc,
        "norms": [bn_params(T) for _ in range(N_FC)],
    }


if __name__ == "__main__":
    key = jax.random.PRNGKey(0)
    k_param, k_x = jax.random.split(key)
    params = init_params(k_param)
    x = jax.random.normal(k_x, (B, T, EMB_INPUT_SIZE), jnp.float32)

    # One-time packing (hoisted out of the per-call path).
    w_all, aff = prepare_params(params, B)

    out = embedded_mapping_forward(x, w_all, aff)
    out = jax.block_until_ready(out)

    ref = ref_forward(x, params)
    assert out.shape == (B, T, H), out.shape
    # f32 matmuls everywhere; tolerance covers XLA's default reduced-precision
    # f32 dot in the reference plus the BN-fold re-association.
    assert jnp.allclose(out, ref, atol=2e-2, rtol=2e-2), \
        float(jnp.max(jnp.abs(out - ref)))

    print("KERNEL_OK")
</pallas_src>

<mosaic_0001>
module attributes {stable_mosaic.version = 11 : i64} {
  func.func @embedded_mapping_kernel(%arg0: i32, %arg1: memref<32x32xf32, #tpu.memory_space<vmem>>, %arg2: memref<2x128x128xf32, #tpu.memory_space<vmem>>, %arg3: memref<2x32x136xf32, #tpu.memory_space<vmem>>, %arg4: memref<32x128xf32, #tpu.memory_space<vmem>>) attributes {dimension_semantics = [#tpu.dimension_semantics<arbitrary>], iteration_bounds = array<i64: 1>, scalar_prefetch = 0 : i64, scratch_operands = 0 : i64, tpu.core_type = #tpu.core_type<tc>, window_params = [{pipeline_mode = #tpu.pipeline_mode<synchronous>, transform_indices = @transform_0, window_bounds = array<i64: 32, 32>}, {pipeline_mode = #tpu.pipeline_mode<synchronous>, transform_indices = @transform_1, window_bounds = array<i64: 2, 128, 128>}, {pipeline_mode = #tpu.pipeline_mode<synchronous>, transform_indices = @transform_2, window_bounds = array<i64: 2, 32, 136>}, {pipeline_mode = #tpu.pipeline_mode<synchronous>, transform_indices = @transform_3, window_bounds = array<i64: 32, 128>}]} {
    %c0 = arith.constant 0 : index
    %c0_0 = arith.constant 0 : index
    %0 = vector.load %arg1[%c0, %c0_0] : memref<32x32xf32, #tpu.memory_space<vmem>>, vector<32x32xf32>
    %c0_1 = arith.constant 0 : index
    %c0_2 = arith.constant 0 : index
    %c0_3 = arith.constant 0 : index
    %1 = vector.load %arg2[%c0_1, %c0_2, %c0_3] : memref<2x128x128xf32, #tpu.memory_space<vmem>>, vector<1x128x128xf32>
    %2 = vector.shape_cast %1 : vector<1x128x128xf32> to vector<128x128xf32>
    %3 = vector.extract_strided_slice %2 {offsets = [0, 0], sizes = [32, 128], strides = [1, 1]} : vector<128x128xf32> to vector<32x128xf32>
    %cst = arith.constant dense<0.000000e+00> : vector<32x128xf32>
    %4 = tpu.matmul %0, %3, %cst {dimension_numbers = #tpu.dot_dimension_numbers<[1], [0], [0], [1], [0, 0, 1, 1], [], []>} : vector<32x32xf32>, vector<32x128xf32>, vector<32x128xf32> -> vector<32x128xf32>
    %c0_4 = arith.constant 0 : index
    %c0_5 = arith.constant 0 : index
    %c0_6 = arith.constant 0 : index
    %5 = vector.load %arg3[%c0_4, %c0_5, %c0_6] : memref<2x32x136xf32, #tpu.memory_space<vmem>>, vector<1x32x136xf32>
    %6 = vector.shape_cast %5 : vector<1x32x136xf32> to vector<32x136xf32>
    %7 = vector.extract_strided_slice %6 {offsets = [0, 128], sizes = [32, 1], strides = [1, 1]} : vector<32x136xf32> to vector<32x1xf32>
    %8 = vector.broadcast %7 : vector<32x1xf32> to vector<32x128xf32>
    %9 = arith.mulf %4, %8 : vector<32x128xf32>
    %10 = vector.extract_strided_slice %6 {offsets = [0, 0], sizes = [32, 128], strides = [1, 1]} : vector<32x136xf32> to vector<32x128xf32>
    %11 = arith.addf %9, %10 : vector<32x128xf32>
    %cst_7 = arith.constant 0.000000e+00 : f32
    %12 = vector.broadcast %cst_7 : f32 to vector<32x128xf32>
    %13 = arith.maximumf %11, %12 : vector<32x128xf32>
    %c1 = arith.constant 1 : index
    %c0_8 = arith.constant 0 : index
    %c0_9 = arith.constant 0 : index
    %14 = vector.load %arg2[%c1, %c0_8, %c0_9] : memref<2x128x128xf32, #tpu.memory_space<vmem>>, vector<1x128x128xf32>
    %15 = vector.shape_cast %14 : vector<1x128x128xf32> to vector<128x128xf32>
    %cst_10 = arith.constant dense<0.000000e+00> : vector<32x128xf32>
    %16 = tpu.matmul %13, %15, %cst_10 {dimension_numbers = #tpu.dot_dimension_numbers<[1], [0], [0], [1], [0, 0, 1, 1], [], []>} : vector<32x128xf32>, vector<128x128xf32>, vector<32x128xf32> -> vector<32x128xf32>
    %c1_11 = arith.constant 1 : index
    %c0_12 = arith.constant 0 : index
    %c0_13 = arith.constant 0 : index
    %17 = vector.load %arg3[%c1_11, %c0_12, %c0_13] : memref<2x32x136xf32, #tpu.memory_space<vmem>>, vector<1x32x136xf32>
    %18 = vector.shape_cast %17 : vector<1x32x136xf32> to vector<32x136xf32>
    %19 = vector.extract_strided_slice %18 {offsets = [0, 128], sizes = [32, 1], strides = [1, 1]} : vector<32x136xf32> to vector<32x1xf32>
    %20 = vector.broadcast %19 : vector<32x1xf32> to vector<32x128xf32>
    %21 = arith.mulf %16, %20 : vector<32x128xf32>
    %22 = vector.extract_strided_slice %18 {offsets = [0, 0], sizes = [32, 128], strides = [1, 1]} : vector<32x136xf32> to vector<32x128xf32>
    %23 = arith.addf %21, %22 : vector<32x128xf32>
    %cst_14 = arith.constant 0.000000e+00 : f32
    %24 = vector.broadcast %cst_14 : f32 to vector<32x128xf32>
    %25 = arith.maximumf %23, %24 : vector<32x128xf32>
    %c0_15 = arith.constant 0 : index
    %c0_16 = arith.constant 0 : index
    %26 = vector.load %arg4[%c0_15, %c0_16] : memref<32x128xf32, #tpu.memory_space<vmem>>, vector<32x128xf32>
    tpu.vector_store %arg4[%c0_15, %c0_16], %25 {strides = array<i32>} : memref<32x128xf32, #tpu.memory_space<vmem>>, vector<32x128xf32>,
    return
  }
  func.func @transform_0(%arg0: i32) -> (i32, i32) {
    %c0_i32 = arith.constant 0 : i32
    %c0_i32_0 = arith.constant 0 : i32
    %c0_i32_1 = arith.constant 0 : i32
    return %c0_i32, %c0_i32_0 : i32, i32
  }
  func.func @transform_1(%arg0: i32) -> (i32, i32, i32) {
    %c0_i32 = arith.constant 0 : i32
    %c0_i32_0 = arith.constant 0 : i32
    %c0_i32_1 = arith.constant 0 : i32
    %c0_i32_2 = arith.constant 0 : i32
    return %c0_i32, %c0_i32_0, %c0_i32_1 : i32, i32, i32
  }
  func.func @transform_2(%arg0: i32) -> (i32, i32, i32) {
    %c0_i32 = arith.constant 0 : i32
    %c0_i32_0 = arith.constant 0 : i32
    %c0_i32_1 = arith.constant 0 : i32
    %c0_i32_2 = arith.constant 0 : i32
    return %c0_i32, %c0_i32_0, %c0_i32_1 : i32, i32, i32
  }
  func.func @transform_3(%arg0: i32) -> (i32, i32) {
    %c0_i32 = arith.constant 0 : i32
    %c0_i32_0 = arith.constant 0 : i32
    %c0_i32_1 = arith.constant 0 : i32
    return %c0_i32, %c0_i32_0 : i32, i32
  }
}

</mosaic_0001>

<bundles_post_ra>
// kernel: embedded_mapping_forward.1
= control target key start
LH: loop header
LB: loop body
LE: loop exit
PB: predicated region body
PF: predicated region fallthrough
CT: control target
= control target key end

     0   :  { %8 = vsyncpa [#allocation3], 0  ;;  %s693_s0 = inlined_call_operand.hbm [shape: f32[32,32], index: 0, kind: input, shape index: {}]   ;;  %s694_s1 = inlined_call_operand.hbm [shape: f32[2,128,128], index: 1, kind: input, shape index: {}]   ;;  %s695_s2 = inlined_call_operand.hbm [shape: f32[2,32,136], index: 2, kind: input, shape index: {}]   ;;  %s696_s3 = inlined_call_operand.hbm [shape: f32[32,128], index: 3, kind: output, shape index: {}]  }
   0x1   :  { %9 = vsyncpa [#allocation6], 0 }
   0x2   :  { %10 = vsyncpa [#allocation4], 0  ;;  %s596_s12 = smov [#allocation5]   ;;  %s597_s14 = smov [#allocation2]  }
   0x3   :  { %s28_s13 = sshll.u32 %s596_s12, 4  ;;  %s16_s15 = sshll.u32 %s597_s14, 4  ;;  %s29_s13 = int_to_ptr.vmem [resolvable:$true] %s28_s13  ;;  %s625_s15 = int_to_ptr.vmem [resolvable:$true] %s16_s15 }
   0x4   :  { %s502_s18 = scalar_lea.hbm %s694_s1, 4096 }
   0x5   :  { %p503_p0 = scmp.ne.s32.totalorder %s694_s1, %s502_s18  ;;  %p506_p1 = scmp.lt.u32.totalorder %s502_s18, %s694_s1 }
   0x7   :  { %p508_p2 = pnand %p506_p1, %p503_p0 }
   0x9   :  { %511 = shalt.err (!%p508_p2)
}
   0xa   :  { %s512_s23 = scalar_lea.vmem %s29_s13, 4096  ;;  %p517_p4 = scmp.lt.s32.totalorder %s29_s13, %s29_s13 }
   0xb   :  { %p513_p3 = scmp.ne.s32.totalorder %s29_s13, %s512_s23  ;;  %p518_p5 = scmp.lt.s32.totalorder %s512_s23, %s512_s23 }
   0xd   :  { %p519_p6 = por %p518_p5, %p517_p4 }
   0xf   :  { %p520_p7 = pnand %p519_p6, %p513_p3 }
  0x11   :  { %523 = shalt.err (!%p520_p7)
}
  0x12   :  { %s598_s24 = smov 128   ;;  %s599_s25 = smov 8  }
  0x13   :  { %34 = dma.hbm_to_vmem [thread:$0]  %s694_s1, 4096, %s29_s13, [#allocation6], %s598_s24, %s598_s24, %s599_s25  }
  0x14   :  { %s524_s30 = scalar_lea.hbm %s693_s0, 512 }
  0x15   :  { %p525_p8 = scmp.ne.s32.totalorder %s693_s0, %s524_s30  ;;  %p528_p9 = scmp.lt.u32.totalorder %s524_s30, %s693_s0 }
  0x17   :  { %p530_p10 = pnand %p528_p9, %p525_p8 }
  0x19   :  { %533 = shalt.err (!%p530_p10)
}
  0x1a   :  { %s534_s8 = scalar_lea.vmem %s625_s15, 512  ;;  %p539_p12 = scmp.lt.s32.totalorder %s625_s15, %s625_s15 }
  0x1b   :  { %p535_p11 = scmp.ne.s32.totalorder %s625_s15, %s534_s8  ;;  %p540_p13 = scmp.lt.s32.totalorder %s534_s8, %s534_s8 }
  0x1d   :  { %p541_p0 = por %p540_p13, %p539_p12 }
  0x1f   :  { %p542_p1 = pnand %p541_p0, %p535_p11 }
  0x21   :  { %545 = shalt.err (!%p542_p1)
}
  0x22   :  { %22 = dma.hbm_to_vmem [thread:$0]  %s693_s0, 512, %s625_s15, [#allocation3], %s598_s24, %s598_s24, %s599_s25  }
  0x23   :  { %s600_s10 = smov [#allocation7]   ;;  %s546_s14 = scalar_lea.hbm %s695_s2, 2048 }
  0x24   :  { %s40_s11 = sshll.u32 %s600_s10, 4  ;;  %p547_p2 = scmp.ne.s32.totalorder %s695_s2, %s546_s14  ;;  %s41_s11 = int_to_ptr.vmem [resolvable:$true] %s40_s11 }
  0x25   :  { %p550_p3 = scmp.lt.u32.totalorder %s546_s14, %s695_s2 }
  0x27   :  { %p552_p4 = pnand %p550_p3, %p547_p2 }
  0x29   :  { %555 = shalt.err (!%p552_p4)
}
  0x2a   :  { %s556_s20 = scalar_lea.vmem %s41_s11, 2048  ;;  %p561_p6 = scmp.lt.s32.totalorder %s41_s11, %s41_s11 }
  0x2b   :  { %p557_p5 = scmp.ne.s32.totalorder %s41_s11, %s556_s20  ;;  %p562_p7 = scmp.lt.s32.totalorder %s556_s20, %s556_s20 }
  0x2d   :  { %p563_p8 = por %p562_p7, %p561_p6 }
  0x2f   :  { %p564_p9 = pnand %p563_p8, %p557_p5 }
  0x31   :  { %567 = shalt.err (!%p564_p9)
}
  0x32   :  { %s601_s0 = smov 256   ;;  %s602_s15 = smov 16  }
  0x33   :  { %46 = dma.hbm_to_vmem [thread:$0]  %s695_s2, 2048, %s41_s11, [#allocation6], %s601_s0, %s601_s0, %s602_s15  }
  0x34   :  { %590 = dma.done.wait [#allocation3], 512  }
  0x35   :  { %591 = vsyncadd [#allocation3], 4294966784 }
  0x36   :  { %592 = dma.done.wait [#allocation6], 6144  }
  0x37   :  { %593 = vsyncadd [#allocation6], 4294961152  ;;  %v603_v0 = vmov 0   ;;  %vm64_vm0 = vcmask 261120   ;;  %v60_v1 = vld [vmem:[#allocation5] sm:$0xff]  ;;  %v61_v2 = vld [vmem:[#allocation5 + $0x8] sm:$0xff] }
  0x38   :  { %500 = vset.pattern.permute.xlu0 %v603_v0  ;;  %501 = vset.pattern.permute.xlu1 %v603_v0  ;;  %v62_v3 = vld [vmem:[#allocation5 + $0x10] sm:$0xff]  ;;  %v451_v4 = vpack.c.bf16 %v61_v2, %v60_v1  ;;  %v63_v5 = vld [vmem:[#allocation5 + $0x18] sm:$0xff]  ;;  %v56_v6 = vld [vmem:[#allocation2] sm:$0xff]  ;;  %s604_s2 = smov [#allocation8]  }
  0x39   :  { %v455_v7 = vpack.c.bf16 %v63_v5, %v62_v3  ;;  %407 = vmatprep.mubr.msk.f32.mxu0 %vm64_vm0, %v56_v6  ;;  %v163_v8 = vld [vmem:[#allocation7 + $0x8] sm:$0xff]  ;;  %v165_v10 = vld [vmem:[#allocation7 + $0x18] sm:$0xff]  ;;  %v203_v12 = vld [vmem:[#allocation5 + $0x80] sm:$0xff]  ;;  %s354_s23 = sshll.u32 %s604_s2, 4  ;;  %s355_s23 = int_to_ptr.vmem [resolvable:$true] %s354_s23 }
  0x3a   :  { %452 = vmatprep.subr.bf16.mxu0 %v451_v4  ;;  %172 = vperm.xlu0 %500, %v163_v8   ;;  %v167_v9 = vld [vmem:[#allocation7 + $0x28] sm:$0xff]  ;;  %v169_v11 = vld [vmem:[#allocation7 + $0x38] sm:$0xff]  ;;  %v205_v15 = vld [vmem:[#allocation5 + $0x90] sm:$0xff]  ;;  %s568_s26 = scalar_lea.vmem %s355_s23, 512  ;;  %p573_p11 = scmp.lt.s32.totalorder %s355_s23, %s355_s23 }
  0x3b   :  { %454 = vmatpush3.bf16.msra.mxu0 %v451_v4  ;;  %182 = vperm.xlu1 %501, %v167_v9   ;;  %v204_v13 = vld [vmem:[#allocation5 + $0x88] sm:$0xff]  ;;  %v206_v16 = vld [vmem:[#allocation5 + $0x98] sm:$0xff]  ;;  %v58_v18 = vld [vmem:[#allocation2 + $0x10] sm:$0xff]  ;;  %p569_p10 = scmp.ne.s32.totalorder %s355_s23, %s568_s26  ;;  %p574_p12 = scmp.lt.s32.totalorder %s568_s26, %s568_s26 }
  0x3c   :  { %456 = vmatprep.subr.bf16.mxu0 %v455_v7  ;;  %v459_v14 = vpack.c.bf16 %v204_v13, %v203_v12  ;;  %v57_v17 = vld [vmem:[#allocation2 + $0x8] sm:$0xff]  ;;  %v308_v20 = vld [vmem:[#allocation7 + $0x58] sm:$0xff]  ;;  %v463_v21 = vpack.c.bf16 %v206_v16, %v205_v15  ;;  %v207_v22 = vld [vmem:[#allocation5 + $0xa0] sm:$0xff] }
  0x3d   :  { %v306_v19 = vld [vmem:[#allocation7 + $0x48] sm:$0xff]  ;;  %v59_v24 = vld [vmem:[#allocation2 + $0x18] sm:$0xff]  ;;  %v209_v27 = vld [vmem:[#allocation5 + $0xb0] sm:$0xff]  ;;  %p575_p13 = por %p574_p12, %p573_p11 }
  0x3e   :  { %177 = vperm.xlu0 %500, %v165_v10   ;;  %460 = vmatprep.subr.bf16.mxu1 %v459_v14  ;;  %v208_v23 = vld [vmem:[#allocation5 + $0xa8] sm:$0xff]  ;;  %v210_v28 = vld [vmem:[#allocation5 + $0xb8] sm:$0xff]  ;;  %v211_v31 = vld [vmem:[#allocation5 + $0xc0] sm:$0xff] }
  0x3f   :  { %458 = vmatpush3.bf16.msra.mxu0 %v455_v7  ;;  %187 = vperm.xlu1 %501, %v169_v11   ;;  %v310_v25 = vld [vmem:[#allocation7 + $0x68] sm:$0xff]  ;;  %v467_v26 = vpack.c.bf16 %v208_v23, %v207_v22  ;;  %v312_v29 = vld [vmem:[#allocation7 + $0x78] sm:$0xff]  ;;  %v471_v30 = vpack.c.bf16 %v210_v28, %v209_v27  ;;  %v213_v34 = vld [vmem:[#allocation5 + $0xd0] sm:$0xff]  ;;  %p576_p0 = pnand %p575_p13, %p569_p10 }
  0x40   :  { %462 = vmatpush3.bf16.msra.mxu1 %v459_v14  ;;  %v212_v32 = vld [vmem:[#allocation5 + $0xc8] sm:$0xff]  ;;  %v214_v35 = vld [vmem:[#allocation5 + $0xd8] sm:$0xff]  ;;  %v215_v37 = vld [vmem:[#allocation5 + $0xe0] sm:$0xff] }
  0x41   :  { %464 = vmatprep.subr.bf16.mxu1 %v463_v21  ;;  %v475_v33 = vpack.c.bf16 %v212_v32, %v211_v31  ;;  %v479_v36 = vpack.c.bf16 %v214_v35, %v213_v34  ;;  %v216_v38 = vld [vmem:[#allocation5 + $0xe8] sm:$0xff]  ;;  %v217_v40 = vld [vmem:[#allocation5 + $0xf0] sm:$0xff]  ;;  %v218_v41 = vld [vmem:[#allocation5 + $0xf8] sm:$0xff] }
  0x42   :  { %408 = vmatmul.mubr.msk.f32.vlgmr.msra.gmra.mrb[0].mxu0 %vm64_vm0, %v57_v17  ;;  %315 = vperm.xlu0 %500, %v306_v19   ;;  %v483_v39 = vpack.c.bf16 %v216_v38, %v215_v37  ;;  %v487_v42 = vpack.c.bf16 %v218_v41, %v217_v40  ;;  %v164_v47 = vld [vmem:[#allocation7 + $0x10] sm:$0xff]  ;;  %v162_v50 = vld [vmem:[#allocation7] sm:$0xff] }
  0x43   :  { %410 = vmatprep.mubr.msk.f32.mxu0 %vm64_vm0, %v58_v18  ;;  %320 = vperm.xlu1 %501, %v308_v20   ;;  %v168_v55 = vld [vmem:[#allocation7 + $0x30] sm:$0xff]  ;;  %v166_v59 = vld [vmem:[#allocation7 + $0x20] sm:$0xff] }
  0x44   :  { %466 = vmatpush3.bf16.msra.mxu1 %v463_v21  ;;  %v307_v6 = vld [vmem:[#allocation7 + $0x50] sm:$0xff]  ;;  %v305_v9 = vld [vmem:[#allocation7 + $0x40] sm:$0xff] }
  0x45   :  { %468 = vmatprep.subr.bf16.mxu1 %v467_v26  ;;  %v311_v15 = vld [vmem:[#allocation7 + $0x70] sm:$0xff]  ;;  %v309_v20 = vld [vmem:[#allocation7 + $0x60] sm:$0xff] }
  0x46   :  { %411 = vmatmul.mubr.msk.f32.gmra.mrb[2].mxu0 %vm64_vm0, %v59_v24  ;;  %325 = vperm.xlu0 %500, %v310_v25  }
  0x47   :  { %330 = vperm.xlu1 %501, %v312_v29  }
  0x48   :  { %470 = vmatpush3.bf16.msra.mxu1 %v467_v26 }
  0x49   :  { %472 = vmatprep.subr.bf16.mxu1 %v471_v30 }
  0x4c   :  { %474 = vmatpush3.bf16.msra.mxu1 %v471_v30 }
  0x4d   :  { %476 = vmatprep.subr.bf16.mxu1 %v475_v33 }
  0x50   :  { %478 = vmatpush3.bf16.msra.mxu1 %v475_v33 }
  0x51   :  { %480 = vmatprep.subr.bf16.mxu1 %v479_v36 }
  0x54   :  { %482 = vmatpush3.bf16.msra.mxu1 %v479_v36 }
  0x55   :  { %484 = vmatprep.subr.bf16.mxu1 %v483_v39 }
  0x58   :  { %486 = vmatpush3.bf16.msra.mxu1 %v483_v39 }
  0x59   :  { %488 = vmatprep.subr.bf16.mxu1 %v487_v42 }
  0x5c   :  { %490 = vmatpush3.bf16.msra.mxu1 %v487_v42 }
  0xb9   :  { %v173_v43 = vpop.permute.xlu0 %172 }
  0xba   :  { %v183_v44 = vpop.permute.xlu1 %182 }
  0xbd   :  { %v178_v45 = vpop.permute.xlu0 %177 }
  0xbe   :  { %v188_v53 = vpop.permute.xlu1 %187 }
  0xc1   :  { %v316_v4 = vpop.permute.xlu0 %315 }
  0xc2   :  { %v321_v3 = vpop.permute.xlu1 %320 }
  0xc5   :  { %v326_v16 = vpop.permute.xlu0 %325 }
  0xc6   :  { %v331_v12 = vpop.permute.xlu1 %330 }
 0x115   :  { %v409_v46 = vpop.f32.mrb[0].mxu0 }
 0x116   :  { %v191_v48 = vmul.f32 %v409_v46, %v178_v45  ;;  %v143_v49 = vpop.f32.mrb[1].mxu0 }
 0x117   :  { %v190_v51 = vmul.f32 %v173_v43, %v143_v49 }
 0x118   :  { %v195_v52 = vadd.f32 %v191_v48, %v164_v47 }
 0x119   :  { %v412_v54 = vpop.f32.mrb[2].mxu0  ;;  %v194_v56 = vadd.f32 %v190_v51, %v162_v50 }
 0x11a   :  { %v193_v57 = vmul.f32 %v412_v54, %v188_v53  ;;  %v153_v58 = vpop.f32.mrb[3].mxu0  ;;  %v199_v62 = vmax.f32 %v195_v52, 0.0 }
 0x11b   :  { %v192_v60 = vmul.f32 %v183_v44, %v153_v58  ;;  %v198_v61 = vmax.f32 %v194_v56, 0.0 }
 0x11c   :  { %v197_v63 = vadd.f32 %v193_v57, %v168_v55 }
 0x11d   :  { %v196_v0 = vadd.f32 %v192_v60, %v166_v59  ;;  %445 = vmatprep.mubr.f32.mxu1 %v198_v61 }
 0x11e   :  { %446 = vmatmul.mubr.f32.vlgmr.msra.gmra.mrb[0].mxu1 %v199_v62  ;;  %v201_v2 = vmax.f32 %v197_v63, 0.0 }
 0x11f   :  { %v200_v1 = vmax.f32 %v196_v0, 0.0 }
 0x121   :  { %448 = vmatprep.mubr.f32.mxu1 %v200_v1 }
 0x122   :  { %449 = vmatmul.mubr.f32.gmra.mrb[2].mxu1 %v201_v2 }
 0x1f1   :  { %v447_v5 = vpop.f32.mrb[0].mxu1 }
 0x1f2   :  { %v334_v7 = vmul.f32 %v447_v5, %v321_v3  ;;  %v285_v8 = vpop.f32.mrb[1].mxu1 }
 0x1f3   :  { %v333_v10 = vmul.f32 %v316_v4, %v285_v8 }
 0x1f4   :  { %v338_v11 = vadd.f32 %v334_v7, %v307_v6 }
 0x1f5   :  { %v337_v13 = vadd.f32 %v333_v10, %v305_v9  ;;  %v450_v14 = vpop.f32.mrb[2].mxu1 }
 0x1f6   :  { %v342_v17 = vmax.f32 %v338_v11, 0.0  ;;  %v336_v18 = vmul.f32 %v450_v14, %v331_v12  ;;  %v295_v19 = vpop.f32.mrb[3].mxu1 }
 0x1f7   :  { %v341_v21 = vmax.f32 %v337_v13, 0.0  ;;  %v335_v22 = vmul.f32 %v326_v16, %v295_v19 }
 0x1f8   :  { %346 = vst [vmem:[#allocation8 + $0x8] sm:$0xff] %v342_v17  ;;  %v340_v23 = vadd.f32 %v336_v18, %v311_v15 }
 0x1f9   :  { %345 = vst [vmem:[#allocation8] sm:$0xff] %v341_v21  ;;  %v339_v24 = vadd.f32 %v335_v22, %v309_v20 }
 0x1fa   :  { %v344_v25 = vmax.f32 %v340_v23, 0.0 }
 0x1fb   :  { %v343_v26 = vmax.f32 %v339_v24, 0.0 }
 0x1fc   :  { %348 = vst [vmem:[#allocation8 + $0x18] sm:$0xff] %v344_v25 }
 0x1fd   :  { %347 = vst [vmem:[#allocation8 + $0x10] sm:$0xff] %v343_v26 }
 0x1fe   :  { %579 = shalt.err (!%p576_p0)
}
 0x1ff   :  { %s580_s29 = scalar_lea.hbm %s696_s3, 512 }
 0x200   :  { %p581_p1 = scmp.ne.s32.totalorder %s696_s3, %s580_s29  ;;  %p584_p2 = scmp.lt.u32.totalorder %s580_s29, %s696_s3 }
 0x202   :  { %p586_p3 = pnand %p584_p2, %p581_p1 }
 0x204   :  { %589 = shalt.err (!%p586_p3)
}
 0x205   :  { %360 = dma.vmem_to_hbm [thread:$0]  %s355_s23, 512, %s696_s3, [#allocation4], %s598_s24, %s598_s24, %s599_s25  }
 0x206   :  { %594 = dma.done.wait [#allocation4], 512  }
 0x207   :  { %595 = vsyncadd [#allocation4], 4294966784 }
 0x208   :  { %364 = vsyncpa [#allocation3], 1 }
 0x209   :  { %365 = vsyncpa [#allocation6], 1 }
 0x20a   :  { %366 = vsyncpa [#allocation4], 1 }

</bundles_post_ra>
